<compile_context>
chip_gen: v7x
topology: tpu7x:2x2x1
jax: 0.10.0
libtpu: 0.0.40
codegen_flags: <defaults>
</compile_context>

<pallas_src>
import functools

import numpy as np
import jax
import jax.numpy as jnp
from jax import lax
from jax.experimental import pallas as pl
from jax.experimental.pallas import tpu as pltpu


# 3x3 tap offsets in row-major order (must match the weight reshape in the wrapper).
_TAP_OFFSETS = tuple((oy, ox) for oy in (-1, 0, 1) for ox in (-1, 0, 1))


def _residual_kernel(x_ref, w1_ref, w2_ref, mask_ref, o_ref, col_ref, *, width):
    """Single grid step processing the whole batch.

    x_ref   : (N, Cin, M)      input, M = H*W flattened spatial (lane axis)
    w1_ref  : (Crh, 9*Cin)     3x3 conv weights, K ordered [tap-major, cin-minor]
    w2_ref  : (Cout, Crh)      1x1 conv weights
    mask_ref: (9, M)           0/1 validity masks (zero padding at image borders)
    o_ref   : (N, Cout, M)     output
    col_ref : (9*Cin, M) VMEM  im2col scratch
    """
    n_batch, c_in, m = x_ref.shape

    w1 = w1_ref[...]          # (Crh, 9*Cin)   hoisted out of the batch loop
    w2 = w2_ref[...]          # (Cout, Crh)
    masks = mask_ref[...]     # (9, M)

    for n in range(n_batch):  # static, unrolled; whole batch in one grid step
        x2d = x_ref[n].astype(jnp.float32)                 # (Cin, M), lane-dense

        # Build im2col: each tap is a lane-roll (XLU slot, ~free) of the flattened
        # image; out-of-image neighbors are zeroed by the mask (== conv zero padding).
        for t, (oy, ox) in enumerate(_TAP_OFFSETS):
            if oy == 0 and ox == 0:
                tap = x2d                                   # center tap: no shift, mask all-ones
            else:
                shift = (-(oy * width + ox)) % m            # static roll amount
                tap = pltpu.roll(x2d, shift, 1) * masks[t:t + 1, :]
            col_ref[t * c_in:(t + 1) * c_in, :] = tap

        col = col_ref[...]                                  # (9*Cin, M)
        # 3x3 conv as one MXU pass with K = 9*Cin, f32 accumulation.
        h = jnp.dot(w1, col, preferred_element_type=jnp.float32)   # (Crh, M)
        h = jnp.maximum(h, 0.0)                                    # ReLU
        # 1x1 conv.
        out = jnp.dot(w2, h, preferred_element_type=jnp.float32)   # (Cout, M)
        out = jnp.maximum(out + x2d, 0.0)                          # residual add (f32) + ReLU
        o_ref[n] = out.astype(o_ref.dtype)                         # lane-dense (Cout, M) store


@jax.jit
def residual_forward(x_nchw, w1_oihw, w2_oihw):
    """x_nchw: (N, Cin, H, W); w1_oihw: (Crh, Cin, 3, 3); w2_oihw: (Cout, Crh, 1, 1)."""
    n, c_in, h, w = x_nchw.shape
    c_rh = w1_oihw.shape[0]
    c_out = w2_oihw.shape[0]
    assert c_out == c_in, "residual add requires num_hiddens == in_channels"
    m = h * w

    # Free reshapes only (contiguous trailing-dim merges) — no layout transposes of x.
    x3 = x_nchw.reshape(n, c_in, m)
    # (Crh, Cin, 3, 3) -> (Crh, 3, 3, Cin) -> (Crh, 9*Cin): tiny one-time weight shuffle.
    w1m = jnp.transpose(w1_oihw, (0, 2, 3, 1)).reshape(c_rh, 9 * c_in)
    w2m = w2_oihw.reshape(c_out, c_rh)

    # 0/1 boundary masks per tap, computed with numpy at trace time (embedded constant).
    yy, xx = np.meshgrid(np.arange(h), np.arange(w), indexing="ij")
    mask_np = np.zeros((9, m), np.float32)
    for t, (oy, ox) in enumerate(_TAP_OFFSETS):
        valid = (yy + oy >= 0) & (yy + oy < h) & (xx + ox >= 0) & (xx + ox < w)
        mask_np[t] = valid.reshape(-1)
    mask = jnp.asarray(mask_np)

    out3 = pl.pallas_call(
        functools.partial(_residual_kernel, width=w),
        out_shape=jax.ShapeDtypeStruct((n, c_out, m), x_nchw.dtype),
        grid=(1,),
        in_specs=[
            pl.BlockSpec((n, c_in, m), lambda i: (0, 0, 0)),
            pl.BlockSpec((c_rh, 9 * c_in), lambda i: (0, 0)),
            pl.BlockSpec((c_out, c_rh), lambda i: (0, 0)),
            pl.BlockSpec((9, m), lambda i: (0, 0)),
        ],
        out_specs=pl.BlockSpec((n, c_out, m), lambda i: (0, 0, 0)),
        scratch_shapes=[pltpu.VMEM((9 * c_in, m), jnp.float32)],
        compiler_params=pltpu.CompilerParams(
            dimension_semantics=("arbitrary",)),
    )(x3, w1m, w2m, mask)

    return out3.reshape(n, c_out, h, w)   # free reshape back to NCHW


def reference_forward(x, w1, w2):
    """Pure-JAX reference matching the PyTorch module (NCHW)."""
    dn = lax.conv_dimension_numbers(x.shape, w1.shape, ("NCHW", "OIHW", "NCHW"))
    out = lax.conv_general_dilated(x, w1, (1, 1), ((1, 1), (1, 1)), dimension_numbers=dn)
    out = jnp.maximum(out, 0.0)
    out = lax.conv_general_dilated(out, w2, (1, 1), "VALID", dimension_numbers=dn)
    out = out + x
    return jnp.maximum(out, 0.0)


if __name__ == "__main__":
    # module config: in_channels = num_hiddens = 4, num_residual_hiddens = 8
    N, Cin, H, W = 2, 4, 16, 16
    Crh, Chid = 8, Cin

    key = jax.random.PRNGKey(0)
    kx, k1, k2 = jax.random.split(key, 3)
    x = jax.random.normal(kx, (N, Cin, H, W), dtype=jnp.float32)
    w1 = jax.random.normal(k1, (Crh, Cin, 3, 3), dtype=jnp.float32) * 0.1   # conv1 weight (OIHW)
    w2 = jax.random.normal(k2, (Chid, Crh, 1, 1), dtype=jnp.float32) * 0.1  # conv2 weight (OIHW)

    out = jax.block_until_ready(residual_forward(x, w1, w2))
    ref = jax.block_until_ready(reference_forward(x, w1, w2))

    assert out.shape == (N, Chid, H, W)
    assert jnp.allclose(out, ref, atol=1e-4, rtol=1e-4), "mismatch vs reference"
    print("KERNEL_OK")
</pallas_src>

<mosaic_0001>
module attributes {stable_mosaic.version = 11 : i64} {
  func.func @_residual_kernel(%arg0: i32, %arg1: memref<2x4x256xf32, #tpu.memory_space<vmem>>, %arg2: memref<8x36xf32, #tpu.memory_space<vmem>>, %arg3: memref<4x8xf32, #tpu.memory_space<vmem>>, %arg4: memref<9x256xf32, #tpu.memory_space<vmem>>, %arg5: memref<2x4x256xf32, #tpu.memory_space<vmem>>, %arg6: memref<36x256xf32, #tpu.memory_space<vmem>>) attributes {dimension_semantics = [#tpu.dimension_semantics<arbitrary>], iteration_bounds = array<i64: 1>, scalar_prefetch = 0 : i64, scratch_operands = 1 : i64, tpu.core_type = #tpu.core_type<tc>, window_params = [{pipeline_mode = #tpu.pipeline_mode<synchronous>, transform_indices = @transform_0, window_bounds = array<i64: 2, 4, 256>}, {pipeline_mode = #tpu.pipeline_mode<synchronous>, transform_indices = @transform_1, window_bounds = array<i64: 8, 36>}, {pipeline_mode = #tpu.pipeline_mode<synchronous>, transform_indices = @transform_2, window_bounds = array<i64: 4, 8>}, {pipeline_mode = #tpu.pipeline_mode<synchronous>, transform_indices = @transform_3, window_bounds = array<i64: 9, 256>}, {pipeline_mode = #tpu.pipeline_mode<synchronous>, transform_indices = @transform_4, window_bounds = array<i64: 2, 4, 256>}]} {
    %c0 = arith.constant 0 : index
    %c0_0 = arith.constant 0 : index
    %0 = vector.load %arg2[%c0, %c0_0] : memref<8x36xf32, #tpu.memory_space<vmem>>, vector<8x36xf32>
    %c0_1 = arith.constant 0 : index
    %c0_2 = arith.constant 0 : index
    %1 = vector.load %arg3[%c0_1, %c0_2] : memref<4x8xf32, #tpu.memory_space<vmem>>, vector<4x8xf32>
    %c0_3 = arith.constant 0 : index
    %c0_4 = arith.constant 0 : index
    %2 = vector.load %arg4[%c0_3, %c0_4] : memref<9x256xf32, #tpu.memory_space<vmem>>, vector<9x256xf32>
    %c0_5 = arith.constant 0 : index
    %c0_6 = arith.constant 0 : index
    %c0_7 = arith.constant 0 : index
    %3 = vector.load %arg1[%c0_5, %c0_6, %c0_7] : memref<2x4x256xf32, #tpu.memory_space<vmem>>, vector<1x4x256xf32>
    %4 = vector.shape_cast %3 : vector<1x4x256xf32> to vector<4x256xf32>
    %c17_i32 = arith.constant 17 : i32
    %5 = tpu.dynamic_rotate %4 by %c17_i32 dim 1 : vector<4x256xf32>, i32 -> vector<4x256xf32>
    %6 = vector.extract_strided_slice %2 {offsets = [0, 0], sizes = [1, 256], strides = [1, 1]} : vector<9x256xf32> to vector<1x256xf32>
    %7 = vector.broadcast %6 : vector<1x256xf32> to vector<4x256xf32>
    %8 = arith.mulf %5, %7 : vector<4x256xf32>
    %c0_8 = arith.constant 0 : index
    %c0_9 = arith.constant 0 : index
    %9 = vector.load %arg6[%c0_8, %c0_9] : memref<36x256xf32, #tpu.memory_space<vmem>>, vector<4x256xf32>
    tpu.vector_store %arg6[%c0_8, %c0_9], %8 {strides = array<i32>} : memref<36x256xf32, #tpu.memory_space<vmem>>, vector<4x256xf32>,
    %c16_i32 = arith.constant 16 : i32
    %10 = tpu.dynamic_rotate %4 by %c16_i32 dim 1 : vector<4x256xf32>, i32 -> vector<4x256xf32>
    %11 = vector.extract_strided_slice %2 {offsets = [1, 0], sizes = [1, 256], strides = [1, 1]} : vector<9x256xf32> to vector<1x256xf32>
    %12 = vector.broadcast %11 : vector<1x256xf32> to vector<4x256xf32>
    %13 = arith.mulf %10, %12 : vector<4x256xf32>
    %c4 = arith.constant 4 : index
    %c0_10 = arith.constant 0 : index
    %14 = vector.load %arg6[%c4, %c0_10] : memref<36x256xf32, #tpu.memory_space<vmem>>, vector<4x256xf32>
    tpu.vector_store %arg6[%c4, %c0_10], %13 {strides = array<i32>} : memref<36x256xf32, #tpu.memory_space<vmem>>, vector<4x256xf32>,
    %c15_i32 = arith.constant 15 : i32
    %15 = tpu.dynamic_rotate %4 by %c15_i32 dim 1 : vector<4x256xf32>, i32 -> vector<4x256xf32>
    %16 = vector.extract_strided_slice %2 {offsets = [2, 0], sizes = [1, 256], strides = [1, 1]} : vector<9x256xf32> to vector<1x256xf32>
    %17 = vector.broadcast %16 : vector<1x256xf32> to vector<4x256xf32>
    %18 = arith.mulf %15, %17 : vector<4x256xf32>
    %c8 = arith.constant 8 : index
    %c0_11 = arith.constant 0 : index
    %19 = vector.load %arg6[%c8, %c0_11] : memref<36x256xf32, #tpu.memory_space<vmem>>, vector<4x256xf32>
    tpu.vector_store %arg6[%c8, %c0_11], %18 {strides = array<i32>} : memref<36x256xf32, #tpu.memory_space<vmem>>, vector<4x256xf32>,
    %c1_i32 = arith.constant 1 : i32
    %20 = tpu.dynamic_rotate %4 by %c1_i32 dim 1 : vector<4x256xf32>, i32 -> vector<4x256xf32>
    %21 = vector.extract_strided_slice %2 {offsets = [3, 0], sizes = [1, 256], strides = [1, 1]} : vector<9x256xf32> to vector<1x256xf32>
    %22 = vector.broadcast %21 : vector<1x256xf32> to vector<4x256xf32>
    %23 = arith.mulf %20, %22 : vector<4x256xf32>
    %c12 = arith.constant 12 : index
    %c0_12 = arith.constant 0 : index
    %24 = vector.load %arg6[%c12, %c0_12] : memref<36x256xf32, #tpu.memory_space<vmem>>, vector<4x256xf32>
    tpu.vector_store %arg6[%c12, %c0_12], %23 {strides = array<i32>} : memref<36x256xf32, #tpu.memory_space<vmem>>, vector<4x256xf32>,
    %c16 = arith.constant 16 : index
    %c0_13 = arith.constant 0 : index
    %25 = vector.load %arg6[%c16, %c0_13] : memref<36x256xf32, #tpu.memory_space<vmem>>, vector<4x256xf32>
    tpu.vector_store %arg6[%c16, %c0_13], %4 {strides = array<i32>} : memref<36x256xf32, #tpu.memory_space<vmem>>, vector<4x256xf32>,
    %c255_i32 = arith.constant 255 : i32
    %26 = tpu.dynamic_rotate %4 by %c255_i32 dim 1 : vector<4x256xf32>, i32 -> vector<4x256xf32>
    %27 = vector.extract_strided_slice %2 {offsets = [5, 0], sizes = [1, 256], strides = [1, 1]} : vector<9x256xf32> to vector<1x256xf32>
    %28 = vector.broadcast %27 : vector<1x256xf32> to vector<4x256xf32>
    %29 = arith.mulf %26, %28 : vector<4x256xf32>
    %c20 = arith.constant 20 : index
    %c0_14 = arith.constant 0 : index
    %30 = vector.load %arg6[%c20, %c0_14] : memref<36x256xf32, #tpu.memory_space<vmem>>, vector<4x256xf32>
    tpu.vector_store %arg6[%c20, %c0_14], %29 {strides = array<i32>} : memref<36x256xf32, #tpu.memory_space<vmem>>, vector<4x256xf32>,
    %c241_i32 = arith.constant 241 : i32
    %31 = tpu.dynamic_rotate %4 by %c241_i32 dim 1 : vector<4x256xf32>, i32 -> vector<4x256xf32>
    %32 = vector.extract_strided_slice %2 {offsets = [6, 0], sizes = [1, 256], strides = [1, 1]} : vector<9x256xf32> to vector<1x256xf32>
    %33 = vector.broadcast %32 : vector<1x256xf32> to vector<4x256xf32>
    %34 = arith.mulf %31, %33 : vector<4x256xf32>
    %c24 = arith.constant 24 : index
    %c0_15 = arith.constant 0 : index
    %35 = vector.load %arg6[%c24, %c0_15] : memref<36x256xf32, #tpu.memory_space<vmem>>, vector<4x256xf32>
    tpu.vector_store %arg6[%c24, %c0_15], %34 {strides = array<i32>} : memref<36x256xf32, #tpu.memory_space<vmem>>, vector<4x256xf32>,
    %c240_i32 = arith.constant 240 : i32
    %36 = tpu.dynamic_rotate %4 by %c240_i32 dim 1 : vector<4x256xf32>, i32 -> vector<4x256xf32>
    %37 = vector.extract_strided_slice %2 {offsets = [7, 0], sizes = [1, 256], strides = [1, 1]} : vector<9x256xf32> to vector<1x256xf32>
    %38 = vector.broadcast %37 : vector<1x256xf32> to vector<4x256xf32>
    %39 = arith.mulf %36, %38 : vector<4x256xf32>
    %c28 = arith.constant 28 : index
    %c0_16 = arith.constant 0 : index
    %40 = vector.load %arg6[%c28, %c0_16] : memref<36x256xf32, #tpu.memory_space<vmem>>, vector<4x256xf32>
    tpu.vector_store %arg6[%c28, %c0_16], %39 {strides = array<i32>} : memref<36x256xf32, #tpu.memory_space<vmem>>, vector<4x256xf32>,
    %c239_i32 = arith.constant 239 : i32
    %41 = tpu.dynamic_rotate %4 by %c239_i32 dim 1 : vector<4x256xf32>, i32 -> vector<4x256xf32>
    %42 = vector.extract_strided_slice %2 {offsets = [8, 0], sizes = [1, 256], strides = [1, 1]} : vector<9x256xf32> to vector<1x256xf32>
    %43 = vector.broadcast %42 : vector<1x256xf32> to vector<4x256xf32>
    %44 = arith.mulf %41, %43 : vector<4x256xf32>
    %c32 = arith.constant 32 : index
    %c0_17 = arith.constant 0 : index
    %45 = vector.load %arg6[%c32, %c0_17] : memref<36x256xf32, #tpu.memory_space<vmem>>, vector<4x256xf32>
    tpu.vector_store %arg6[%c32, %c0_17], %44 {strides = array<i32>} : memref<36x256xf32, #tpu.memory_space<vmem>>, vector<4x256xf32>,
    %c0_18 = arith.constant 0 : index
    %c0_19 = arith.constant 0 : index
    %46 = vector.load %arg6[%c0_18, %c0_19] : memref<36x256xf32, #tpu.memory_space<vmem>>, vector<36x256xf32>
    %cst = arith.constant dense<0.000000e+00> : vector<8x256xf32>
    %47 = tpu.matmul %0, %46, %cst {dimension_numbers = #tpu.dot_dimension_numbers<[1], [0], [0], [1], [0, 0, 1, 1], [], []>} : vector<8x36xf32>, vector<36x256xf32>, vector<8x256xf32> -> vector<8x256xf32>
    %cst_20 = arith.constant 0.000000e+00 : f32
    %48 = vector.broadcast %cst_20 : f32 to vector<8x256xf32>
    %49 = arith.maximumf %47, %48 : vector<8x256xf32>
    %cst_21 = arith.constant dense<0.000000e+00> : vector<4x256xf32>
    %50 = tpu.matmul %1, %49, %cst_21 {dimension_numbers = #tpu.dot_dimension_numbers<[1], [0], [0], [1], [0, 0, 1, 1], [], []>} : vector<4x8xf32>, vector<8x256xf32>, vector<4x256xf32> -> vector<4x256xf32>
    %51 = arith.addf %50, %4 : vector<4x256xf32>
    %cst_22 = arith.constant 0.000000e+00 : f32
    %52 = vector.broadcast %cst_22 : f32 to vector<4x256xf32>
    %53 = arith.maximumf %51, %52 : vector<4x256xf32>
    %c0_23 = arith.constant 0 : index
    %c0_24 = arith.constant 0 : index
    %c0_25 = arith.constant 0 : index
    %54 = vector.load %arg5[%c0_23, %c0_24, %c0_25] : memref<2x4x256xf32, #tpu.memory_space<vmem>>, vector<1x4x256xf32>
    %55 = vector.shape_cast %54 : vector<1x4x256xf32> to vector<4x256xf32>
    %56 = vector.shape_cast %53 : vector<4x256xf32> to vector<1x4x256xf32>
    tpu.vector_store %arg5[%c0_23, %c0_24, %c0_25], %56 {strides = array<i32>} : memref<2x4x256xf32, #tpu.memory_space<vmem>>, vector<1x4x256xf32>,
    %c1 = arith.constant 1 : index
    %c0_26 = arith.constant 0 : index
    %c0_27 = arith.constant 0 : index
    %57 = vector.load %arg1[%c1, %c0_26, %c0_27] : memref<2x4x256xf32, #tpu.memory_space<vmem>>, vector<1x4x256xf32>
    %58 = vector.shape_cast %57 : vector<1x4x256xf32> to vector<4x256xf32>
    %c17_i32_28 = arith.constant 17 : i32
    %59 = tpu.dynamic_rotate %58 by %c17_i32_28 dim 1 : vector<4x256xf32>, i32 -> vector<4x256xf32>
    %60 = vector.extract_strided_slice %2 {offsets = [0, 0], sizes = [1, 256], strides = [1, 1]} : vector<9x256xf32> to vector<1x256xf32>
    %61 = vector.broadcast %60 : vector<1x256xf32> to vector<4x256xf32>
    %62 = arith.mulf %59, %61 : vector<4x256xf32>
    %c0_29 = arith.constant 0 : index
    %c0_30 = arith.constant 0 : index
    %63 = vector.load %arg6[%c0_29, %c0_30] : memref<36x256xf32, #tpu.memory_space<vmem>>, vector<4x256xf32>
    tpu.vector_store %arg6[%c0_29, %c0_30], %62 {strides = array<i32>} : memref<36x256xf32, #tpu.memory_space<vmem>>, vector<4x256xf32>,
    %c16_i32_31 = arith.constant 16 : i32
    %64 = tpu.dynamic_rotate %58 by %c16_i32_31 dim 1 : vector<4x256xf32>, i32 -> vector<4x256xf32>
    %65 = vector.extract_strided_slice %2 {offsets = [1, 0], sizes = [1, 256], strides = [1, 1]} : vector<9x256xf32> to vector<1x256xf32>
    %66 = vector.broadcast %65 : vector<1x256xf32> to vector<4x256xf32>
    %67 = arith.mulf %64, %66 : vector<4x256xf32>
    %c4_32 = arith.constant 4 : index
    %c0_33 = arith.constant 0 : index
    %68 = vector.load %arg6[%c4_32, %c0_33] : memref<36x256xf32, #tpu.memory_space<vmem>>, vector<4x256xf32>
    tpu.vector_store %arg6[%c4_32, %c0_33], %67 {strides = array<i32>} : memref<36x256xf32, #tpu.memory_space<vmem>>, vector<4x256xf32>,
    %c15_i32_34 = arith.constant 15 : i32
    %69 = tpu.dynamic_rotate %58 by %c15_i32_34 dim 1 : vector<4x256xf32>, i32 -> vector<4x256xf32>
    %70 = vector.extract_strided_slice %2 {offsets = [2, 0], sizes = [1, 256], strides = [1, 1]} : vector<9x256xf32> to vector<1x256xf32>
    %71 = vector.broadcast %70 : vector<1x256xf32> to vector<4x256xf32>
    %72 = arith.mulf %69, %71 : vector<4x256xf32>
    %c8_35 = arith.constant 8 : index
    %c0_36 = arith.constant 0 : index
    %73 = vector.load %arg6[%c8_35, %c0_36] : memref<36x256xf32, #tpu.memory_space<vmem>>, vector<4x256xf32>
    tpu.vector_store %arg6[%c8_35, %c0_36], %72 {strides = array<i32>} : memref<36x256xf32, #tpu.memory_space<vmem>>, vector<4x256xf32>,
    %c1_i32_37 = arith.constant 1 : i32
    %74 = tpu.dynamic_rotate %58 by %c1_i32_37 dim 1 : vector<4x256xf32>, i32 -> vector<4x256xf32>
    %75 = vector.extract_strided_slice %2 {offsets = [3, 0], sizes = [1, 256], strides = [1, 1]} : vector<9x256xf32> to vector<1x256xf32>
    %76 = vector.broadcast %75 : vector<1x256xf32> to vector<4x256xf32>
    %77 = arith.mulf %74, %76 : vector<4x256xf32>
    %c12_38 = arith.constant 12 : index
    %c0_39 = arith.constant 0 : index
    %78 = vector.load %arg6[%c12_38, %c0_39] : memref<36x256xf32, #tpu.memory_space<vmem>>, vector<4x256xf32>
    tpu.vector_store %arg6[%c12_38, %c0_39], %77 {strides = array<i32>} : memref<36x256xf32, #tpu.memory_space<vmem>>, vector<4x256xf32>,
    %c16_40 = arith.constant 16 : index
    %c0_41 = arith.constant 0 : index
    %79 = vector.load %arg6[%c16_40, %c0_41] : memref<36x256xf32, #tpu.memory_space<vmem>>, vector<4x256xf32>
    tpu.vector_store %arg6[%c16_40, %c0_41], %58 {strides = array<i32>} : memref<36x256xf32, #tpu.memory_space<vmem>>, vector<4x256xf32>,
    %c255_i32_42 = arith.constant 255 : i32
    %80 = tpu.dynamic_rotate %58 by %c255_i32_42 dim 1 : vector<4x256xf32>, i32 -> vector<4x256xf32>
    %81 = vector.extract_strided_slice %2 {offsets = [5, 0], sizes = [1, 256], strides = [1, 1]} : vector<9x256xf32> to vector<1x256xf32>
    %82 = vector.broadcast %81 : vector<1x256xf32> to vector<4x256xf32>
    %83 = arith.mulf %80, %82 : vector<4x256xf32>
    %c20_43 = arith.constant 20 : index
    %c0_44 = arith.constant 0 : index
    %84 = vector.load %arg6[%c20_43, %c0_44] : memref<36x256xf32, #tpu.memory_space<vmem>>, vector<4x256xf32>
    tpu.vector_store %arg6[%c20_43, %c0_44], %83 {strides = array<i32>} : memref<36x256xf32, #tpu.memory_space<vmem>>, vector<4x256xf32>,
    %c241_i32_45 = arith.constant 241 : i32
    %85 = tpu.dynamic_rotate %58 by %c241_i32_45 dim 1 : vector<4x256xf32>, i32 -> vector<4x256xf32>
    %86 = vector.extract_strided_slice %2 {offsets = [6, 0], sizes = [1, 256], strides = [1, 1]} : vector<9x256xf32> to vector<1x256xf32>
    %87 = vector.broadcast %86 : vector<1x256xf32> to vector<4x256xf32>
    %88 = arith.mulf %85, %87 : vector<4x256xf32>
    %c24_46 = arith.constant 24 : index
    %c0_47 = arith.constant 0 : index
    %89 = vector.load %arg6[%c24_46, %c0_47] : memref<36x256xf32, #tpu.memory_space<vmem>>, vector<4x256xf32>
    tpu.vector_store %arg6[%c24_46, %c0_47], %88 {strides = array<i32>} : memref<36x256xf32, #tpu.memory_space<vmem>>, vector<4x256xf32>,
    %c240_i32_48 = arith.constant 240 : i32
    %90 = tpu.dynamic_rotate %58 by %c240_i32_48 dim 1 : vector<4x256xf32>, i32 -> vector<4x256xf32>
    %91 = vector.extract_strided_slice %2 {offsets = [7, 0], sizes = [1, 256], strides = [1, 1]} : vector<9x256xf32> to vector<1x256xf32>
    %92 = vector.broadcast %91 : vector<1x256xf32> to vector<4x256xf32>
    %93 = arith.mulf %90, %92 : vector<4x256xf32>
    %c28_49 = arith.constant 28 : index
    %c0_50 = arith.constant 0 : index
    %94 = vector.load %arg6[%c28_49, %c0_50] : memref<36x256xf32, #tpu.memory_space<vmem>>, vector<4x256xf32>
    tpu.vector_store %arg6[%c28_49, %c0_50], %93 {strides = array<i32>} : memref<36x256xf32, #tpu.memory_space<vmem>>, vector<4x256xf32>,
    %c239_i32_51 = arith.constant 239 : i32
    %95 = tpu.dynamic_rotate %58 by %c239_i32_51 dim 1 : vector<4x256xf32>, i32 -> vector<4x256xf32>
    %96 = vector.extract_strided_slice %2 {offsets = [8, 0], sizes = [1, 256], strides = [1, 1]} : vector<9x256xf32> to vector<1x256xf32>
    %97 = vector.broadcast %96 : vector<1x256xf32> to vector<4x256xf32>
    %98 = arith.mulf %95, %97 : vector<4x256xf32>
    %c32_52 = arith.constant 32 : index
    %c0_53 = arith.constant 0 : index
    %99 = vector.load %arg6[%c32_52, %c0_53] : memref<36x256xf32, #tpu.memory_space<vmem>>, vector<4x256xf32>
    tpu.vector_store %arg6[%c32_52, %c0_53], %98 {strides = array<i32>} : memref<36x256xf32, #tpu.memory_space<vmem>>, vector<4x256xf32>,
    %c0_54 = arith.constant 0 : index
    %c0_55 = arith.constant 0 : index
    %100 = vector.load %arg6[%c0_54, %c0_55] : memref<36x256xf32, #tpu.memory_space<vmem>>, vector<36x256xf32>
    %cst_56 = arith.constant dense<0.000000e+00> : vector<8x256xf32>
    %101 = tpu.matmul %0, %100, %cst_56 {dimension_numbers = #tpu.dot_dimension_numbers<[1], [0], [0], [1], [0, 0, 1, 1], [], []>} : vector<8x36xf32>, vector<36x256xf32>, vector<8x256xf32> -> vector<8x256xf32>
    %cst_57 = arith.constant 0.000000e+00 : f32
    %102 = vector.broadcast %cst_57 : f32 to vector<8x256xf32>
    %103 = arith.maximumf %101, %102 : vector<8x256xf32>
    %cst_58 = arith.constant dense<0.000000e+00> : vector<4x256xf32>
    %104 = tpu.matmul %1, %103, %cst_58 {dimension_numbers = #tpu.dot_dimension_numbers<[1], [0], [0], [1], [0, 0, 1, 1], [], []>} : vector<4x8xf32>, vector<8x256xf32>, vector<4x256xf32> -> vector<4x256xf32>
    %105 = arith.addf %104, %58 : vector<4x256xf32>
    %cst_59 = arith.constant 0.000000e+00 : f32
    %106 = vector.broadcast %cst_59 : f32 to vector<4x256xf32>
    %107 = arith.maximumf %105, %106 : vector<4x256xf32>
    %c1_60 = arith.constant 1 : index
    %c0_61 = arith.constant 0 : index
    %c0_62 = arith.constant 0 : index
    %108 = vector.load %arg5[%c1_60, %c0_61, %c0_62] : memref<2x4x256xf32, #tpu.memory_space<vmem>>, vector<1x4x256xf32>
    %109 = vector.shape_cast %108 : vector<1x4x256xf32> to vector<4x256xf32>
    %110 = vector.shape_cast %107 : vector<4x256xf32> to vector<1x4x256xf32>
    tpu.vector_store %arg5[%c1_60, %c0_61, %c0_62], %110 {strides = array<i32>} : memref<2x4x256xf32, #tpu.memory_space<vmem>>, vector<1x4x256xf32>,
    return
  }
  func.func @transform_0(%arg0: i32) -> (i32, i32, i32) {
    %c0_i32 = arith.constant 0 : i32
    %c0_i32_0 = arith.constant 0 : i32
    %c0_i32_1 = arith.constant 0 : i32
    %c0_i32_2 = arith.constant 0 : i32
    return %c0_i32, %c0_i32_0, %c0_i32_1 : i32, i32, i32
  }
  func.func @transform_1(%arg0: i32) -> (i32, i32) {
    %c0_i32 = arith.constant 0 : i32
    %c0_i32_0 = arith.constant 0 : i32
    %c0_i32_1 = arith.constant 0 : i32
    return %c0_i32, %c0_i32_0 : i32, i32
  }
  func.func @transform_2(%arg0: i32) -> (i32, i32) {
    %c0_i32 = arith.constant 0 : i32
    %c0_i32_0 = arith.constant 0 : i32
    %c0_i32_1 = arith.constant 0 : i32
    return %c0_i32, %c0_i32_0 : i32, i32
  }
  func.func @transform_3(%arg0: i32) -> (i32, i32) {
    %c0_i32 = arith.constant 0 : i32
    %c0_i32_0 = arith.constant 0 : i32
    %c0_i32_1 = arith.constant 0 : i32
    return %c0_i32, %c0_i32_0 : i32, i32
  }
  func.func @transform_4(%arg0: i32) -> (i32, i32, i32) {
    %c0_i32 = arith.constant 0 : i32
    %c0_i32_0 = arith.constant 0 : i32
    %c0_i32_1 = arith.constant 0 : i32
    %c0_i32_2 = arith.constant 0 : i32
    return %c0_i32, %c0_i32_0, %c0_i32_1 : i32, i32, i32
  }
}

</mosaic_0001>

<bundles_post_ra>
// kernel: residual_forward.1
= control target key start
LH: loop header
LB: loop body
LE: loop exit
PB: predicated region body
PF: predicated region fallthrough
CT: control target
= control target key end

     0   :  { %s705_s17 = smov 1   ;;  %s706_s18 = smov 16   ;;  %v713_v4 = vmov 0.0   ;;  %v31_v5 = vlaneseq  ;;  %vm221_vm8 = vcmask 1043456   ;;  %vm217_vm9 = vcmask 293888   ;;  %s1006_s0 = inlined_call_operand.vmem [shape: f32[2,4,256], index: 0, kind: input, shape index: {}]   ;;  %s1007_s3 = inlined_call_operand.vmem [shape: f32[9,256], index: 3, kind: input, shape index: {}]   ;;  %s1008_s1 = inlined_call_operand.vmem [shape: f32[8,36], index: 1, kind: input, shape index: {}]   ;;  %s1009_s2 = inlined_call_operand.vmem [shape: f32[4,8], index: 2, kind: input, shape index: {}]   ;;  %s1010_s4 = inlined_call_operand.vmem [shape: f32[2,4,256], index: 4, kind: output, shape index: {}]  }
   0x1   :  { %v742_v0 = vld [vmem:[%s1006_s0] sm:$0xff]  ;;  %s707_s19 = smov 17   ;;  %s708_s20 = smov 15   ;;  %v769_v2 = vld [vmem:[%s1006_s0 + $0x8] sm:$0xff]  ;;  %292 = vmatprep.mubr.f32.mxu0 %v713_v4  ;;  %369 = vmatprep.mubr.f32.mxu1 %v713_v4  ;;  %vm301_vm10 = vcmask 64512  }
   0x2   :  { %92 = vrot.lane.b32.xlu1 %v742_v0, %s705_s17  ;;  %117 = vst [vmem:[#allocation2 + $0x20] sm:$0xf] %v742_v0  ;;  %48 = vrot.lane.b32.xlu0 %v742_v0, %s706_s18  ;;  %v750_v1 = vcombine.high %v742_v0, %v742_v0  ;;  %s709_s21 = smov 127   ;;  %s710_s22 = smov 112   ;;  %v775_v3 = vcombine.high %v769_v2, %v769_v2  ;;  %v797_v6 = vshrl.u32 %v31_v5, 7  ;;  %v799_v7 = vand.u32 127, %v31_v5 }
   0x3   :  { %s711_s23 = smov 113   ;;  %s712_s26 = smov 111   ;;  %v806_v10 = vld [vmem:[%s1007_s3] sm:$0xff]  ;;  %v811_v11 = vld [vmem:[%s1007_s3 + $0x8] sm:$0xff] }
   0x4   :  { %118 = vst [vmem:[#allocation2 + $0x28] sm:$0xf] %v750_v1  ;;  %v101_v8 = vsub.s32 3, %v797_v6  ;;  %v57_v9 = vsub.s32 1, %v797_v6  ;;  %v38_v14 = vsub.s32 0, %v797_v6  ;;  %vm96_vm0 = vcmp.lt.s32.totalorder %v799_v7, 1 }
   0x5   :  { %vm52_vm1 = vcmp.lt.s32.totalorder %v799_v7, 16  ;;  %vm33_vm2 = vcmp.lt.s32.totalorder %v799_v7, 17  ;;  %v82_v23 = vsub.s32 2, %v797_v6  ;;  %vm77_vm3 = vcmp.lt.s32.totalorder %v799_v7, 15 }
   0x6   :  { %94 = vrot.lane.b32.xlu1 %v750_v1, %s705_s17  ;;  %50 = vrot.lane.b32.xlu0 %v750_v1, %s706_s18  ;;  %v817_v15 = vrot.slane %v806_v10, %v101_v8  ;;  %v820_v16 = vrot.slane %v811_v11, %v101_v8  ;;  %v823_v17 = vrot.slane %v806_v10, %v57_v9  ;;  %v128_v44 = vsub.s32 5, %v797_v6 }
   0x7   :  { %v826_v18 = vrot.slane %v811_v11, %v57_v9  ;;  %v830_v21 = vrot.slane %v806_v10, %v38_v14  ;;  %v833_v22 = vrot.slane %v811_v11, %v38_v14  ;;  %v854_v40 = vrot.slane %v806_v10, %v82_v23 }
   0x8   :  { %v859_v43 = vrot.slane %v811_v11, %v82_v23  ;;  %vm123_vm4 = vcmp.lt.s32.totalorder %v799_v7, 127  ;;  %v172_v49 = vsub.s32 7, %v797_v6  ;;  %v871_v52 = vrot.slane %v806_v10, %v128_v44 }
   0x9   :  { %v874_v53 = vrot.slane %v811_v11, %v128_v44  ;;  %vm167_vm5 = vcmp.lt.s32.totalorder %v799_v7, 112  ;;  %v153_v62 = vsub.s32 6, %v797_v6  ;;  %vm148_vm6 = vcmp.lt.s32.totalorder %v799_v7, 113 }
   0xa   :  { %29 = vrot.lane.b32.xlu1 %v750_v1, %s707_s19  ;;  %27 = vrot.lane.b32.xlu0 %v742_v0, %s707_s19  ;;  %v882_v58 = vrot.slane %v806_v10, %v172_v49  ;;  %v887_v61 = vrot.slane %v811_v11, %v172_v49  ;;  %vm192_vm7 = vcmp.lt.s32.totalorder %v799_v7, 111 }
   0xb   :  { %v898_v6 = vrot.slane %v806_v10, %v153_v62 }
   0xe   :  { %75 = vrot.lane.b32.xlu1 %v750_v1, %s708_s20  ;;  %73 = vrot.lane.b32.xlu0 %v742_v0, %s708_s20 }
  0x12   :  { %121 = vrot.lane.b32.xlu1 %v750_v1, %s709_s21  ;;  %119 = vrot.lane.b32.xlu0 %v742_v0, %s709_s21 }
  0x16   :  { %165 = vrot.lane.b32.xlu1 %v750_v1, %s710_s22  ;;  %163 = vrot.lane.b32.xlu0 %v742_v0, %s710_s22 }
  0x1a   :  { %146 = vrot.lane.b32.xlu1 %v750_v1, %s711_s23  ;;  %144 = vrot.lane.b32.xlu0 %v742_v0, %s711_s23 }
  0x1e   :  { %190 = vrot.lane.b32.xlu1 %v750_v1, %s712_s26  ;;  %188 = vrot.lane.b32.xlu0 %v742_v0, %s712_s26 }
  0x22   :  { %400 = vrot.lane.b32.xlu1 %v775_v3, %s706_s18  ;;  %398 = vrot.lane.b32.xlu0 %v769_v2, %s706_s18 }
  0x26   :  { %426 = vrot.lane.b32.xlu1 %v775_v3, %s705_s17  ;;  %424 = vrot.lane.b32.xlu0 %v769_v2, %s705_s17 }
  0x2a   :  { %390 = vrot.lane.b32.xlu1 %v775_v3, %s707_s19  ;;  %388 = vrot.lane.b32.xlu0 %v769_v2, %s707_s19 }
  0x2e   :  { %416 = vrot.lane.b32.xlu1 %v775_v3, %s708_s20  ;;  %414 = vrot.lane.b32.xlu0 %v769_v2, %s708_s20 }
  0x32   :  { %444 = vrot.lane.b32.xlu1 %v775_v3, %s709_s21  ;;  %442 = vrot.lane.b32.xlu0 %v769_v2, %s709_s21 }
  0x36   :  { %470 = vrot.lane.b32.xlu1 %v775_v3, %s710_s22  ;;  %468 = vrot.lane.b32.xlu0 %v769_v2, %s710_s22 }
  0x3a   :  { %460 = vrot.lane.b32.xlu1 %v775_v3, %s711_s23  ;;  %458 = vrot.lane.b32.xlu0 %v769_v2, %s711_s23 }
  0x3e   :  { %486 = vrot.lane.b32.xlu1 %v775_v3, %s712_s26  ;;  %484 = vrot.lane.b32.xlu0 %v769_v2, %s712_s26 }
  0x74   :  { %v93_v12 = vpop.permute.xlu1 %92  ;;  %v49_v13 = vpop.permute.xlu0 %48 }
  0x78   :  { %v95_v19 = vpop.permute.xlu1 %94  ;;  %v51_v20 = vpop.permute.xlu0 %50 }
  0x79   :  { %v97_v24 = vsel %vm96_vm0, %v93_v12, %v95_v19  ;;  %v98_v25 = vsel %vm96_vm0, %v95_v19, %v93_v12  ;;  %v53_v26 = vsel %vm52_vm1, %v49_v13, %v51_v20  ;;  %v54_v27 = vsel %vm52_vm1, %v51_v20, %v49_v13 }
  0x7a   :  { %v107_v28 = vmul.f32 %v817_v15, %v98_v25  ;;  %v108_v29 = vmul.f32 %v820_v16, %v97_v24  ;;  %v63_v30 = vmul.f32 %v823_v17, %v54_v27  ;;  %v64_v31 = vmul.f32 %v826_v18, %v53_v26 }
  0x7b   :  { %v901_v20 = vrot.slane %v811_v11, %v153_v62 }
  0x7c   :  { %v111_v32 = vrot.slane %v107_v28, 4  ;;  %v112_v33 = vrot.slane %v108_v29, 4  ;;  %v67_v34 = vrot.slane %v63_v30, 4  ;;  %v68_v35 = vrot.slane %v64_v31, 4  ;;  %v30_v36 = vpop.permute.xlu1 %29  ;;  %v28_v37 = vpop.permute.xlu0 %27 }
  0x7d   :  { %v34_v38 = vsel %vm33_vm2, %v28_v37, %v30_v36  ;;  %v35_v39 = vsel %vm33_vm2, %v30_v36, %v28_v37  ;;  %v918_v36 = vld [vmem:[%s1007_s3 + $0x18] ss:$0 sm:$0xff] }
  0x7e   :  { %115 = vst [vmem:[#allocation2 + $0x10] sm:$0xf0] %v111_v32  ;;  %116 = vst [vmem:[#allocation2 + $0x18] sm:$0xf0] %v112_v33  ;;  %v44_v41 = vmul.f32 %v830_v21, %v35_v39  ;;  %v45_v42 = vmul.f32 %v833_v22, %v34_v38 }
  0x7f   :  { %71 = vst [vmem:[#allocation2] sm:$0xf0] %v67_v34  ;;  %72 = vst [vmem:[#allocation2 + $0x8] sm:$0xf0] %v68_v35  ;;  %v913_v35 = vld [vmem:[%s1007_s3 + $0x10] ss:$0 sm:$0xff] }
  0x80   :  { %46 = vst [vmem:[#allocation2] sm:$0xf] %v44_v41  ;;  %47 = vst [vmem:[#allocation2 + $0x8] sm:$0xf] %v45_v42  ;;  %v76_v45 = vpop.permute.xlu1 %75  ;;  %v74_v46 = vpop.permute.xlu0 %73 }
  0x81   :  { %v78_v47 = vsel %vm77_vm3, %v74_v46, %v76_v45  ;;  %v79_v48 = vsel %vm77_vm3, %v76_v45, %v74_v46 }
  0x82   :  { %v88_v50 = vmul.f32 %v854_v40, %v79_v48  ;;  %v89_v51 = vmul.f32 %v859_v43, %v78_v47 }
  0x84   :  { %90 = vst [vmem:[#allocation2 + $0x10] sm:$0xf] %v88_v50  ;;  %91 = vst [vmem:[#allocation2 + $0x18] sm:$0xf] %v89_v51  ;;  %v122_v54 = vpop.permute.xlu1 %121  ;;  %v120_v55 = vpop.permute.xlu0 %119 }
  0x85   :  { %v124_v56 = vsel %vm123_vm4, %v120_v55, %v122_v54  ;;  %v125_v57 = vsel %vm123_vm4, %v122_v54, %v120_v55 }
  0x86   :  { %v134_v59 = vmul.f32 %v871_v52, %v124_v56  ;;  %v135_v60 = vmul.f32 %v874_v53, %v125_v57 }
  0x87   :  { %v208_v23 = vld [vmem:[#allocation2 + $0x8] sm:$0xff]  ;;  %v207_v25 = vld [vmem:[#allocation2] sm:$0xff] }
  0x88   :  { %v138_v63 = vrot.slane %v134_v59, 4  ;;  %v139_v5 = vrot.slane %v135_v60, 4  ;;  %v166_v8 = vpop.permute.xlu1 %165  ;;  %v164_v9 = vpop.permute.xlu0 %163 }
  0x89   :  { %v168_v12 = vsel %vm167_vm5, %v164_v9, %v166_v8  ;;  %v169_v13 = vsel %vm167_vm5, %v166_v8, %v164_v9 }
  0x8a   :  { %142 = vst [vmem:[#allocation2 + $0x20] sm:$0xf0] %v138_v63  ;;  %143 = vst [vmem:[#allocation2 + $0x28] sm:$0xf0] %v139_v5  ;;  %v178_v14 = vmul.f32 %v882_v58, %v168_v12  ;;  %v179_v19 = vmul.f32 %v887_v61, %v169_v13 }
  0x8b   :  { %v210_v24 = vld [vmem:[#allocation2 + $0x18] sm:$0xff]  ;;  %v209_v26 = vld [vmem:[#allocation2 + $0x10] sm:$0xff] }
  0x8c   :  { %v182_v27 = vrot.slane %v178_v14, 4  ;;  %v183_v28 = vrot.slane %v179_v19, 4  ;;  %v147_v29 = vpop.permute.xlu1 %146  ;;  %v145_v30 = vpop.permute.xlu0 %144  ;;  %v678_v31 = vpack.c.bf16 %v210_v24, %v208_v23  ;;  %v680_v32 = vpack.c.bf16 %v209_v26, %v207_v25  ;;  %v944_v25 = vld [vmem:[%s1008_s1] sm:$0xff] }
  0x8d   :  { %v149_v33 = vsel %vm148_vm6, %v145_v30, %v147_v29  ;;  %v150_v10 = vsel %vm148_vm6, %v147_v29, %v145_v30 }
  0x8e   :  { %186 = vst [vmem:[#allocation2 + $0x30] sm:$0xf0] %v182_v27  ;;  %187 = vst [vmem:[#allocation2 + $0x38] sm:$0xf0] %v183_v28  ;;  %v159_v11 = vmul.f32 %v898_v6, %v149_v33  ;;  %v160_v34 = vmul.f32 %v901_v20, %v150_v10  ;;  %679 = vmatprep.subr.bf16.mxu0 %v678_v31 }
  0x8f   :  { %681 = vmatpush1.bf16.msra.mxu0 %v680_v32 }
  0x90   :  { %161 = vst [vmem:[#allocation2 + $0x30] sm:$0xf] %v159_v11  ;;  %162 = vst [vmem:[#allocation2 + $0x38] sm:$0xf] %v160_v34  ;;  %v191_v37 = vpop.permute.xlu1 %190  ;;  %v189_v38 = vpop.permute.xlu0 %188 }
  0x91   :  { %v193_v39 = vsel %vm192_vm7, %v189_v38, %v191_v37  ;;  %v194_v41 = vsel %vm192_vm7, %v191_v37, %v189_v38  ;;  %v212_v42 = vld [vmem:[#allocation2 + $0x28] sm:$0xff]  ;;  %v211_v44 = vld [vmem:[#allocation2 + $0x20] sm:$0xff] }
  0x92   :  { %v203_v45 = vmul.f32 %v913_v35, %v193_v39  ;;  %v204_v46 = vmul.f32 %v918_v36, %v194_v41  ;;  %441 = vst [vmem:[#allocation2 + $0x28] sm:$0xf] %v775_v3  ;;  %440 = vst [vmem:[#allocation2 + $0x20] sm:$0xf] %v769_v2 }
  0x94   :  { %205 = vst [vmem:[#allocation2 + $0x40] sm:$0xf] %v203_v45  ;;  %206 = vst [vmem:[#allocation2 + $0x48] sm:$0xf] %v204_v46  ;;  %v401_v47 = vpop.permute.xlu1 %400  ;;  %v399_v48 = vpop.permute.xlu0 %398 }
  0x95   :  { %v402_v49 = vsel %vm52_vm1, %v399_v48, %v401_v47  ;;  %v403_v50 = vsel %vm52_vm1, %v401_v47, %v399_v48 }
  0x96   :  { %v404_v51 = vmul.f32 %v403_v50, %v823_v17  ;;  %v405_v54 = vmul.f32 %v402_v49, %v826_v18 }
  0x97   :  { %v214_v55 = vld [vmem:[#allocation2 + $0x38] sm:$0xff]  ;;  %v213_v56 = vld [vmem:[#allocation2 + $0x30] sm:$0xff] }
  0x98   :  { %v682_v57 = vpack.c.bf16 %v214_v55, %v212_v42  ;;  %v684_v59 = vpack.c.bf16 %v213_v56, %v211_v44  ;;  %v408_v60 = vrot.slane %v404_v51, 4  ;;  %v409_v62 = vrot.slane %v405_v54, 4  ;;  %v427_v63 = vpop.permute.xlu1 %426  ;;  %v425_v5 = vpop.permute.xlu0 %424 }
  0x99   :  { %v428_v8 = vsel %vm96_vm0, %v425_v5, %v427_v63  ;;  %v429_v9 = vsel %vm96_vm0, %v427_v63, %v425_v5 }
  0x9a   :  { %683 = vmatprep.subr.bf16.mxu0 %v682_v57  ;;  %412 = vst [vmem:[#allocation2] sm:$0xf0] %v408_v60  ;;  %413 = vst [vmem:[#allocation2 + $0x8] sm:$0xf0] %v409_v62  ;;  %v430_v17 = vmul.f32 %v429_v9, %v817_v15  ;;  %v431_v18 = vmul.f32 %v428_v8, %v820_v16  ;;  %v18_v9 = vld [vmem:[%s1009_s2] sm:$0xf] }
  0x9b   :  { %685 = vmatpush1.bf16.msra.mxu0 %v684_v59  ;;  %v216_v12 = vld [vmem:[#allocation2 + $0x48] sm:$0xf]  ;;  %v215_v13 = vld [vmem:[#allocation2 + $0x40] sm:$0xf] }
  0x9c   :  { %668 = vmatprep.subr.msk.mxu0 %vm221_vm8, %v216_v12  ;;  %v434_v14 = vrot.slane %v430_v17, 4  ;;  %v435_v19 = vrot.slane %v431_v18, 4  ;;  %v391_v23 = vpop.permute.xlu1 %390  ;;  %v389_v24 = vpop.permute.xlu0 %388 }
  0x9d   :  { %v392_v15 = vsel %vm33_vm2, %v389_v24, %v391_v23  ;;  %v393_v16 = vsel %vm33_vm2, %v391_v23, %v389_v24 }
  0x9e   :  { %438 = vst [vmem:[#allocation2 + $0x10] sm:$0xf0] %v434_v14  ;;  %439 = vst [vmem:[#allocation2 + $0x18] sm:$0xf0] %v435_v19  ;;  %v394_v26 = vmul.f32 %v393_v16, %v830_v21  ;;  %v395_v27 = vmul.f32 %v392_v15, %v833_v22 }
  0x9f   :  { %669 = vmatpush1.msk.msra.mxu0 %vm221_vm8, %v215_v13 }
  0xa0   :  { %670 = vmatmul.mubr.msk.f32.vlgmr.msra.gmra.mrb[0].mxu0 %vm217_vm9, %v944_v25  ;;  %396 = vst [vmem:[#allocation2] sm:$0xf] %v394_v26  ;;  %397 = vst [vmem:[#allocation2 + $0x8] sm:$0xf] %v395_v27  ;;  %v417_v28 = vpop.permute.xlu1 %416  ;;  %v415_v29 = vpop.permute.xlu0 %414 }
  0xa1   :  { %v418_v30 = vsel %vm77_vm3, %v415_v29, %v417_v28  ;;  %v419_v31 = vsel %vm77_vm3, %v417_v28, %v415_v29  ;;  %647 = vmatprep.mubr.f32.mxu0 %v713_v4 }
  0xa2   :  { %v420_v21 = vmul.f32 %v419_v31, %v854_v40  ;;  %v421_v22 = vmul.f32 %v418_v30, %v859_v43 }
  0xa4   :  { %422 = vst [vmem:[#allocation2 + $0x10] sm:$0xf] %v420_v21  ;;  %423 = vst [vmem:[#allocation2 + $0x18] sm:$0xf] %v421_v22  ;;  %v445_v32 = vpop.permute.xlu1 %444  ;;  %v443_v33 = vpop.permute.xlu0 %442 }
  0xa5   :  { %v446_v10 = vsel %vm123_vm4, %v443_v33, %v445_v32  ;;  %v447_v11 = vsel %vm123_vm4, %v445_v32, %v443_v33 }
  0xa6   :  { %v448_v34 = vmul.f32 %v446_v10, %v871_v52  ;;  %v449_v37 = vmul.f32 %v447_v11, %v874_v53 }
  0xa7   :  { %v495_v60 = vld [vmem:[#allocation2 + $0x8] sm:$0xff]  ;;  %v494_v63 = vld [vmem:[#allocation2] sm:$0xff] }
  0xa8   :  { %v452_v38 = vrot.slane %v448_v34, 4  ;;  %v453_v39 = vrot.slane %v449_v37, 4  ;;  %v471_v41 = vpop.permute.xlu1 %470  ;;  %v469_v40 = vpop.permute.xlu0 %468 }
  0xa9   :  { %v472_v43 = vsel %vm167_vm5, %v469_v40, %v471_v41  ;;  %v473_v42 = vsel %vm167_vm5, %v471_v41, %v469_v40 }
  0xaa   :  { %456 = vst [vmem:[#allocation2 + $0x20] sm:$0xf0] %v452_v38  ;;  %457 = vst [vmem:[#allocation2 + $0x28] sm:$0xf0] %v453_v39  ;;  %v474_v44 = vmul.f32 %v472_v43, %v882_v58  ;;  %v475_v45 = vmul.f32 %v473_v42, %v887_v61 }
  0xab   :  { %v496_v5 = vld [vmem:[#allocation2 + $0x10] sm:$0xff] }
  0xac   :  { %v478_v46 = vrot.slane %v474_v44, 4  ;;  %v479_v52 = vrot.slane %v475_v45, 4  ;;  %v461_v47 = vpop.permute.xlu1 %460  ;;  %v459_v53 = vpop.permute.xlu0 %458 }
  0xad   :  { %v462_v48 = vsel %vm148_vm6, %v459_v53, %v461_v47  ;;  %v463_v49 = vsel %vm148_vm6, %v461_v47, %v459_v53 }
  0xae   :  { %482 = vst [vmem:[#allocation2 + $0x30] sm:$0xf0] %v478_v46  ;;  %483 = vst [vmem:[#allocation2 + $0x38] sm:$0xf0] %v479_v52  ;;  %v464_v50 = vmul.f32 %v462_v48, %v898_v6  ;;  %v465_v51 = vmul.f32 %v463_v49, %v901_v20  ;;  %v497_v20 = vld [vmem:[#allocation2 + $0x18] sm:$0xff] }
  0xb0   :  { %466 = vst [vmem:[#allocation2 + $0x30] sm:$0xf] %v464_v50  ;;  %467 = vst [vmem:[#allocation2 + $0x38] sm:$0xf] %v465_v51  ;;  %v487_v58 = vpop.permute.xlu1 %486  ;;  %v485_v61 = vpop.permute.xlu0 %484 }
  0xb1   :  { %v488_v54 = vsel %vm192_vm7, %v485_v61, %v487_v58  ;;  %v489_v55 = vsel %vm192_vm7, %v487_v58, %v485_v61  ;;  %v499_v7 = vld [vmem:[#allocation2 + $0x28] sm:$0xff]  ;;  %v498_v12 = vld [vmem:[#allocation2 + $0x20] sm:$0xff] }
  0xb2   :  { %v490_v56 = vmul.f32 %v913_v35, %v488_v54  ;;  %v491_v57 = vmul.f32 %v918_v36, %v489_v55  ;;  %v686_v35 = vpack.c.bf16 %v497_v20, %v495_v60  ;;  %v688_v36 = vpack.c.bf16 %v496_v5, %v494_v63 }
  0xb4   :  { %492 = vst [vmem:[#allocation2 + $0x40] sm:$0xf] %v490_v56  ;;  %493 = vst [vmem:[#allocation2 + $0x48] sm:$0xf] %v491_v57 }
  0xb7   :  { %v501_v17 = vld [vmem:[#allocation2 + $0x38] sm:$0xff]  ;;  %v500_v13 = vld [vmem:[#allocation2 + $0x30] sm:$0xff] }
  0xb8   :  { %v690_v18 = vpack.c.bf16 %v501_v17, %v499_v7  ;;  %v692_v14 = vpack.c.bf16 %v500_v13, %v498_v12 }
  0xbb   :  { %v503_v19 = vld [vmem:[#allocation2 + $0x48] sm:$0xf]  ;;  %v502_v23 = vld [vmem:[#allocation2 + $0x40] sm:$0xf] }
 0x173   :  { %v294_v59 = vpop.f32.mrb[0].mxu0 }
 0x174   :  { %v296_v6 = vpop.f32.mrb[1].mxu0  ;;  %v299_v8 = vmax.f32 %v294_v59, 0.0 }
 0x175   :  { %v300_v62 = vmax.f32 %v296_v6, 0.0 }
 0x177   :  { %305 = vmatprep.subr.mxu1 %v300_v62 }
 0x178   :  { %306 = vmatpush1.msra.mxu1 %v299_v8 }
 0x179   :  { %671 = vmatmul.mubr.msk.f32.vlgmr.msra.gmra.mrb[0].mxu1 %vm301_vm10, %v18_v9  ;;  %687 = vmatprep.subr.bf16.mxu1 %v686_v35 }
 0x17a   :  { %689 = vmatpush1.bf16.msra.mxu1 %v688_v36  ;;  %574 = vmatprep.mubr.f32.mxu1 %v713_v4 }
 0x17b   :  { %691 = vmatprep.subr.bf16.mxu1 %v690_v18 }
 0x17e   :  { %693 = vmatpush1.bf16.msra.mxu1 %v692_v14 }
 0x17f   :  { %673 = vmatprep.subr.msk.mxu1 %vm221_vm8, %v503_v19 }
 0x182   :  { %674 = vmatpush1.msk.msra.mxu1 %vm221_vm8, %v502_v23 }
 0x183   :  { %675 = vmatmul.mubr.msk.f32.vlgmr.msra.gmra.mrb[2].mxu1 %vm217_vm9, %v944_v25 }
 0x24c   :  { %v371_v24 = vpop.f32.mrb[0].mxu1 }
 0x24d   :  { %v372_v15 = vadd.f32 %v371_v24, %v742_v0  ;;  %v373_v16 = vpop.f32.mrb[1].mxu1 }
 0x24e   :  { %v374_v26 = vadd.f32 %v373_v16, %v750_v1 }
 0x24f   :  { %v376_v27 = vmax.f32 %v372_v15, 0.0 }
 0x250   :  { %v377_v4 = vmax.f32 %v374_v26, 0.0 }
 0x252   :  { %v380_v28 = vcombine.low %v376_v27, %v377_v4 }
 0x254   :  { %382 = vst [vmem:[%s1010_s4] sm:$0xff] %v380_v28 }
 0x256   :  { %v576_v29 = vpop.f32.mrb[2].mxu1 }
 0x257   :  { %v578_v30 = vpop.f32.mrb[3].mxu1  ;;  %v581_v21 = vmax.f32 %v576_v29, 0.0 }
 0x258   :  { %v582_v31 = vmax.f32 %v578_v30, 0.0 }
 0x25a   :  { %583 = vmatprep.subr.mxu0 %v582_v31 }
 0x25b   :  { %584 = vmatpush1.msra.mxu0 %v581_v21 }
 0x25c   :  { %676 = vmatmul.mubr.msk.f32.vlgmr.msra.gmra.mrb[2].mxu0 %vm301_vm10, %v18_v9 }
 0x32f   :  { %v649_v25 = vpop.f32.mrb[2].mxu0 }
 0x330   :  { %v650_v0 = vadd.f32 %v769_v2, %v649_v25  ;;  %v651_v22 = vpop.f32.mrb[3].mxu0 }
 0x331   :  { %v652_v1 = vadd.f32 %v651_v22, %v775_v3 }
 0x332   :  { %v654_v32 = vmax.f32 %v650_v0, 0.0 }
 0x333   :  { %v655_v33 = vmax.f32 %v652_v1, 0.0 }
 0x335   :  { %v658_v10 = vcombine.low %v654_v32, %v655_v33 }
 0x337   :  { %677 = vst [vmem:[%s1010_s4 + $0x8] sm:$0xff] %v658_v10 }

</bundles_post_ra>
